<compile_context>
chip_gen: v7x
topology: tpu7x:2x2x1
jax: 0.10.0
libtpu: 0.0.40
codegen_flags: <defaults>
</compile_context>

<pallas_src>
import jax
import jax.numpy as jnp
from jax.experimental import pallas as pl
from jax.experimental.pallas import tpu as pltpu


# Per-array tile budget for the scaled-up (tiled) path.  With double-buffered
# input + output tiles this is 4 * 4 MiB = 16 MiB, comfortably under the
# 32 MiB default scoped-VMEM limit on v7x (which has only 64 MiB physical
# VMEM per TensorCore, half of v5e/v6e).
_VMEM_TILE_BUDGET_BYTES = 4 * 1024 * 1024


def _identity_kernel(x_ref, o_ref):
    # Elementwise pass-through (the "InputLayer" with no defined op).
    o_ref[...] = x_ref[...]


def _copy_2d(x2d: jax.Array) -> jax.Array:
    """Identity copy of a lane-dense 2D slab on TPU via Pallas."""
    rows, cols = x2d.shape
    itemsize = jnp.dtype(x2d.dtype).itemsize
    nbytes = rows * cols * itemsize
    cost = pl.CostEstimate(flops=0, transcendentals=0, bytes_accessed=2 * nbytes)

    if nbytes <= _VMEM_TILE_BUDGET_BYTES:
        # Small case (the demo input): single gridless VMEM-resident block,
        # no pipeline prologue/epilogue, no double-buffer setup.
        return pl.pallas_call(
            _identity_kernel,
            out_shape=jax.ShapeDtypeStruct(x2d.shape, x2d.dtype),
            in_specs=[pl.BlockSpec(memory_space=pltpu.MemorySpace.VMEM)],
            out_specs=pl.BlockSpec(memory_space=pltpu.MemorySpace.VMEM),
            input_output_aliases={0: 0},
            cost_estimate=cost,
        )(x2d)

    # Large case: 1-D grid over rows, lane-dense tiles (full last dim).
    row_bytes = cols * itemsize
    max_rows_fit = max(1, _VMEM_TILE_BUDGET_BYTES // row_bytes)
    tile_rows = min(rows, max_rows_fit)
    if tile_rows < rows:
        # Sublane-align the tile (multiple of 8 rows).
        tile_rows = max(8, (tile_rows // 8) * 8)
        tile_rows = min(tile_rows, rows)

    grid = (pl.cdiv(rows, tile_rows),)
    return pl.pallas_call(
        _identity_kernel,
        out_shape=jax.ShapeDtypeStruct(x2d.shape, x2d.dtype),
        grid=grid,
        in_specs=[pl.BlockSpec((tile_rows, cols), lambda i: (i, 0))],
        out_specs=pl.BlockSpec((tile_rows, cols), lambda i: (i, 0)),
        input_output_aliases={0: 0},
        cost_estimate=cost,
        compiler_params=pltpu.CompilerParams(
            dimension_semantics=("parallel",),
        ),
    )(x2d)


@jax.jit
def model_forward(x: jax.Array) -> jax.Array:
    """Pallas equivalent of Model.forward for the placeholder module.

    Presents a lane-dense 2D view (N*C, H*W) to the kernel (free,
    order-preserving reshape), runs the identity kernel, and reshapes back
    to NCHW.
    """
    n, c, h, w = x.shape
    x2d = x.reshape(n * c, h * w)   # (8, 256) for the demo shape; last dim % 128 == 0
    out2d = _copy_2d(x2d)
    return out2d.reshape(n, c, h, w)


if __name__ == "__main__":
    key = jax.random.PRNGKey(0)
    # Small NCHW input consistent with a generic conv-style module.
    x = jax.random.normal(key, (2, 4, 16, 16), dtype=jnp.float32)

    out = model_forward(x)
    out = jax.block_until_ready(out)

    # Sanity check: identity semantics.
    assert out.shape == x.shape
    assert jnp.allclose(out, x)

    print("KERNEL_OK")
</pallas_src>

<mosaic_0001>
module attributes {stable_mosaic.version = 11 : i64} {
  func.func @_identity_kernel(%arg0: memref<8x256xf32, #tpu.memory_space<vmem>>, %arg1: memref<8x256xf32, #tpu.memory_space<vmem>>) attributes {dimension_semantics = [], scalar_prefetch = 0 : i64, scratch_operands = 0 : i64, tpu.core_type = #tpu.core_type<tc>} {
    %c0 = arith.constant 0 : index
    %c0_0 = arith.constant 0 : index
    %0 = vector.load %arg0[%c0, %c0_0] : memref<8x256xf32, #tpu.memory_space<vmem>>, vector<8x256xf32>
    %c0_1 = arith.constant 0 : index
    %c0_2 = arith.constant 0 : index
    %1 = vector.load %arg1[%c0_1, %c0_2] : memref<8x256xf32, #tpu.memory_space<vmem>>, vector<8x256xf32>
    tpu.vector_store %arg1[%c0_1, %c0_2], %0 {strides = array<i32>} : memref<8x256xf32, #tpu.memory_space<vmem>>, vector<8x256xf32>,
    return
  }
}

</mosaic_0001>

<bundles_post_ra>
// kernel: model_forward.1
= control target key start
LH: loop header
LB: loop body
LE: loop exit
PB: predicated region body
PF: predicated region fallthrough
CT: control target
= control target key end

     0   :  { %s38_s0 = inlined_call_operand.vmem [shape: f32[8,256], index: 0, kind: input, shape index: {}, may-alias: {0,1}]   ;;  %s39_s1 = inlined_call_operand.vmem [shape: f32[8,256], index: 1, kind: output, shape index: {}, may-alias: {0,1}]  }
   0x1   :  { %v8_v0 = vld [vmem:[%s38_s0] sm:$0xff]  ;;  %v9_v1 = vld [vmem:[%s38_s0 + $0x8] sm:$0xff] }
   0x2   :  { %10 = vst [vmem:[%s39_s1] sm:$0xff] %v8_v0  ;;  %11 = vst [vmem:[%s39_s1 + $0x8] sm:$0xff] %v9_v1 }

</bundles_post_ra>
